<compile_context>
chip_gen: v5e
topology: v5e:2x2
jax: 0.10.0
libtpu: 0.0.40
codegen_flags: <defaults>
</compile_context>

<pallas_src>
import functools

import jax
import jax.numpy as jnp
from jax import lax
from jax.experimental import pallas as pl
from jax.experimental.pallas import tpu as pltpu


# ----------------------------- helpers (glue) -------------------------------

def get_same_padding(kernel_size: int) -> int:
    assert kernel_size % 2 == 1
    return kernel_size // 2


def sub_filter_start_end(kernel_size: int, sub_kernel_size: int):
    center = kernel_size // 2
    dev = sub_kernel_size // 2
    return center - dev, center + dev + 1


def _round_up(x: int, m: int) -> int:
    return (x + m - 1) // m * m


# ------------------------ fast path kernel (stride == 1) --------------------

def _dw_conv_rows_kernel(x_ref, w_ref, o_ref, slab_ref, sh_ref, *,
                         k, dilation, th, th_ext, woc, c, pad, H, W):
    """One (batch, row-tile) grid step, lane-dense fused (W*C) layout.

    x_ref   : (1, H, W*C)       unpadded fused image for this batch (re-DMA'd
                                only at batch boundaries)
    w_ref   : (k, k, woc)       per-tap weights pre-tiled across Wo, lane-padded
    o_ref   : (1, th, woc)      output row tile (lane-dense)
    slab_ref: (hp, wpc) VMEM    zero-padded fused image, rebuilt at row-tile 0
    sh_ref  : (k, th_ext, woc)  per-dx lane-pre-shifted row slabs (f32)
    """
    i = pl.program_id(1)

    # Build the padded slab for this batch once (first row tile of the batch).
    @pl.when(i == 0)
    def _build_padded_slab():
        slab_ref[...] = jnp.zeros_like(slab_ref)
        slab_ref[pad:pad + H, pad * c:pad * c + W * c] = x_ref[0]

    row0 = pl.multiple_of(i * th, 8)          # th is a multiple of 8

    # One extended-row load per tile; k static lane slices staged into VMEM so
    # the dy (row) offsets below are plain loads, not XLU rotates:
    # XLU lane-shift passes per tile drop from k^2 to k.
    ext = slab_ref[pl.ds(row0, th_ext), :].astype(jnp.float32)   # (th_ext, wpc)
    for dx in range(k):
        start = dx * dilation * c
        sh_ref[dx] = lax.slice(ext, (0, start), (th_ext, start + woc))

    acc = jnp.zeros((th, woc), jnp.float32)
    for dy in range(k):
        r0 = dy * dilation
        for dx in range(k):
            acc = acc + sh_ref[dx, pl.ds(r0, th), :] * w_ref[dy, dx, :]
    # TODO(synk): if bundle dumps show spills for large th * k, convert the dy
    #             loop to lax.fori_loop to bound live ranges.
    o_ref[0] = acc.astype(o_ref.dtype)


def _depthwise_conv_stride1(x_nchw, w_kkc, k, dilation):
    N, C, H, W = x_nchw.shape
    pad = get_same_padding(k)
    Ho = H + 2 * pad - dilation * (k - 1)
    Wo = W + 2 * pad - dilation * (k - 1)
    assert Ho >= 1 and Wo >= 1, (Ho, Wo)

    woc = Wo * C
    woc_pad = _round_up(woc, 128)             # unmasked full-lane stores
    halo = _round_up(dilation * (k - 1), 8)

    # Row tile: multiple of 8; ~16 f32 accumulator vregs, leaving headroom for
    # the (th_ext, wpc) row slab that is live at the same time.
    th = max(8, min(256, (16 * 1024) // max(woc_pad, 1)))
    th = max(8, (th // 8) * 8)
    th = min(th, _round_up(Ho, 8))
    n_ht = pl.cdiv(Ho, th)
    ho_pad = n_ht * th
    th_ext = th + halo
    hp = ho_pad + halo                        # padded slab rows
    wpc = dilation * (k - 1) * C + woc_pad    # padded slab fused width

    # Static bounds checks: every pl.ds window stays inside the VMEM slab.
    assert (n_ht - 1) * th + th_ext <= hp
    assert pad + H <= hp and pad * C + W * C <= wpc

    # NCHW -> fused NHWC (H, W*C).  The reshape is metadata-only; the transpose
    # is the single remaining HBM layout pass (zero padding is now in-kernel).
    # TODO(synk): accept NHWC activations / emit fused NHWC output directly to
    #             drop the remaining transpose passes for NHWC pipelines.
    x_f = jnp.transpose(x_nchw, (0, 2, 3, 1)).reshape(N, H, W * C)

    # Per-tap weights pre-tiled across Wo (hoists the lane broadcast out of the
    # kernel) and zero-padded to the lane-dense output width.
    w_tiled = jnp.broadcast_to(
        w_kkc[:, :, None, :], (k, k, Wo, C)).reshape(k, k, woc)
    if woc_pad > woc:
        w_tiled = jnp.pad(w_tiled, ((0, 0), (0, 0), (0, woc_pad - woc)))
    w_tiled = w_tiled.astype(jnp.float32)

    kernel = functools.partial(
        _dw_conv_rows_kernel, k=k, dilation=dilation, th=th, th_ext=th_ext,
        woc=woc_pad, c=C, pad=pad, H=H, W=W)

    y_f = pl.pallas_call(
        kernel,
        out_shape=jax.ShapeDtypeStruct((N, ho_pad, woc_pad), x_nchw.dtype),
        grid_spec=pltpu.PrefetchScalarGridSpec(
            num_scalar_prefetch=0,
            grid=(N, n_ht),
            in_specs=[
                # Whole unpadded image per batch (block index changes only at
                # batch boundaries so it is DMA'd once per batch).
                # TODO(synk): halo'd row-tile input blocks (manual DMA) for
                #             very large images so v7x's 64 MiB VMEM is safe.
                pl.BlockSpec((1, H, W * C), lambda n, i: (n, 0, 0)),
                pl.BlockSpec((k, k, woc_pad), lambda n, i: (0, 0, 0)),
            ],
            out_specs=pl.BlockSpec((1, th, woc_pad), lambda n, i: (n, i, 0)),
            scratch_shapes=[
                pltpu.VMEM((hp, wpc), x_nchw.dtype),            # padded slab
                pltpu.VMEM((k, th_ext, woc_pad), jnp.float32),  # per-dx shifts
            ]),
        compiler_params=pltpu.CompilerParams(
            # Row-tile axis carries the per-batch slab state -> "arbitrary";
            # the batch axis is safe to shard across cores.
            dimension_semantics=("parallel", "arbitrary")),
    )(x_f, w_tiled)

    y = y_f[:, :Ho, :woc].reshape(N, Ho, Wo, C)
    return jnp.transpose(y, (0, 3, 1, 2))


# -------------------- fallback (stride > 1, not the default) ----------------

def _depthwise_conv_general(x_nchw, w_kkc, k, stride, dilation):
    # A stride-s "same padding" conv equals the ::s subsampling of the
    # stride-1 result at the same padding, so reuse the lane-dense fast path.
    # TODO(synk): dedicated strided kernel (fold stride into the dy row / dx
    #             lane offsets) to avoid the s^2 extra MACs.
    y1 = _depthwise_conv_stride1(x_nchw, w_kkc, k, dilation)
    return y1[:, :, ::stride, ::stride]


# ------------------------------ module wrapper -------------------------------

class DynamicSeparableConv2dPallas:
    """JAX/Pallas port of DynamicSeparableConv2d (channels_per_group == 1)."""

    KERNEL_TRANSFORM_MODE = None

    def __init__(self, max_in_channels, kernel_size_list, stride=1,
                 dilation=1, channels_per_group=1, *, key=None):
        assert channels_per_group == 1, "depthwise path (channels_per_group=1)"
        self.max_in_channels = max_in_channels
        self.kernel_size_list = kernel_size_list
        self.stride = stride
        self.dilation = dilation
        self.channels_per_group = channels_per_group
        self.active_kernel_size = max(kernel_size_list)

        kmax = max(kernel_size_list)
        if key is None:
            key = jax.random.PRNGKey(0)
        fan_in = channels_per_group * kmax * kmax
        bound = 1.0 / (fan_in ** 0.5)
        self.weight = jax.random.uniform(
            key, (max_in_channels, channels_per_group, kmax, kmax),
            dtype=jnp.float32, minval=-bound, maxval=bound)

    def get_active_filter(self, in_channel, kernel_size):
        kmax = max(self.kernel_size_list)
        start, end = sub_filter_start_end(kmax, kernel_size)
        return self.weight[:in_channel, :, start:end, start:end]

    def __call__(self, x, kernel_size=None):
        # x: NCHW (PyTorch convention)
        if kernel_size is None:
            kernel_size = self.active_kernel_size
        N, C, H, W = x.shape
        assert C % self.channels_per_group == 0
        k = kernel_size

        filters = self.get_active_filter(C, k)            # (C, 1, k, k)
        w_kkc = jnp.transpose(filters[:, 0], (1, 2, 0))   # (k, k, C)

        if self.stride == 1:
            return _depthwise_conv_stride1(x, w_kkc, k, self.dilation)
        return _depthwise_conv_general(x, w_kkc, k, self.stride, self.dilation)


# ------------------------------ reference check ------------------------------

def _reference_depthwise_conv(x, filters, stride, pad, dilation):
    # x: NCHW, filters: (C, 1, k, k)
    C = x.shape[1]
    return lax.conv_general_dilated(
        x, filters,
        window_strides=(stride, stride),
        padding=((pad, pad), (pad, pad)),
        rhs_dilation=(dilation, dilation),
        dimension_numbers=("NCHW", "OIHW", "NCHW"),
        feature_group_count=C,
    )


if __name__ == "__main__":
    key = jax.random.PRNGKey(0)
    k_w, k_x = jax.random.split(key)

    # module config
    max_in_channels = 8
    kernel_size_list = [3, 5, 7]
    stride = 1
    dilation = 1

    mod = DynamicSeparableConv2dPallas(
        max_in_channels, kernel_size_list, stride=stride,
        dilation=dilation, channels_per_group=1, key=k_w)

    # small deterministic input, NCHW
    N, C, H, W = 2, 8, 16, 16
    x = jax.random.normal(k_x, (N, C, H, W), dtype=jnp.float32)

    # exercise a sub-kernel (dynamic kernel size smaller than max)
    active_ks = 5
    y = mod(x, kernel_size=active_ks)
    y = jax.block_until_ready(y)

    # correctness check against XLA depthwise conv
    filters = mod.get_active_filter(C, active_ks)
    pad = get_same_padding(active_ks)
    y_ref = _reference_depthwise_conv(x, filters, stride, pad, dilation)
    assert y.shape == y_ref.shape, (y.shape, y_ref.shape)
    assert jnp.allclose(y, y_ref, atol=1e-4, rtol=1e-4), \
        float(jnp.max(jnp.abs(y - y_ref)))

    print("KERNEL_OK")
</pallas_src>

<mosaic_0001>
module attributes {stable_mosaic.version = 11 : i64} {
  func.func @_dw_conv_rows_kernel(%arg0: i32, %arg1: i32, %arg2: memref<1x16x128xf32, #tpu.memory_space<vmem>>, %arg3: memref<5x5x128xf32, #tpu.memory_space<vmem>>, %arg4: memref<1x16x128xf32, #tpu.memory_space<vmem>>, %arg5: memref<24x160xf32, #tpu.memory_space<vmem>>, %arg6: memref<5x24x128xf32, #tpu.memory_space<vmem>>) attributes {dimension_semantics = [#tpu.dimension_semantics<parallel>, #tpu.dimension_semantics<arbitrary>], iteration_bounds = array<i64: 2, 1>, scalar_prefetch = 0 : i64, scratch_operands = 2 : i64, tpu.core_type = #tpu.core_type<tc>, window_params = [{transform_indices = @transform_0, window_bounds = array<i64: 1, 16, 128>}, {pipeline_mode = #tpu.pipeline_mode<synchronous>, transform_indices = @transform_1, window_bounds = array<i64: 5, 5, 128>}, {transform_indices = @transform_2, window_bounds = array<i64: 1, 16, 128>}]} {
    %c0_i32 = arith.constant 0 : i32
    %0 = arith.cmpi eq, %arg1, %c0_i32 : i32
    %1 = arith.extui %0 : i1 to i32
    %c0_i32_0 = arith.constant 0 : i32
    %2 = arith.cmpi ne, %1, %c0_i32_0 : i32
    scf.if %2 {
      %cst_165 = arith.constant 0.000000e+00 : f32
      %231 = vector.broadcast %cst_165 : f32 to vector<24x160xf32>
      %c0_166 = arith.constant 0 : index
      %c0_167 = arith.constant 0 : index
      %232 = vector.load %arg5[%c0_166, %c0_167] : memref<24x160xf32, #tpu.memory_space<vmem>>, vector<24x160xf32>
      tpu.vector_store %arg5[%c0_166, %c0_167], %231 {strides = array<i32>} : memref<24x160xf32, #tpu.memory_space<vmem>>, vector<24x160xf32>,
      %c0_168 = arith.constant 0 : index
      %c0_169 = arith.constant 0 : index
      %c0_170 = arith.constant 0 : index
      %233 = vector.load %arg2[%c0_168, %c0_169, %c0_170] : memref<1x16x128xf32, #tpu.memory_space<vmem>>, vector<1x16x128xf32>
      %234 = vector.shape_cast %233 : vector<1x16x128xf32> to vector<16x128xf32>
      %c2_171 = arith.constant 2 : index
      %c16 = arith.constant 16 : index
      %235 = vector.load %arg5[%c2_171, %c16] : memref<24x160xf32, #tpu.memory_space<vmem>>, vector<16x128xf32>
      tpu.vector_store %arg5[%c2_171, %c16], %234 {strides = array<i32>} : memref<24x160xf32, #tpu.memory_space<vmem>>, vector<16x128xf32>,
    } else {
    }
    %c16_i32 = arith.constant 16 : i32
    %3 = arith.muli %arg1, %c16_i32 : i32
    %4 = tpu.assume_multiple %3, 8 : i32
    %5 = arith.index_cast %4 : i32 to index
    %c0 = arith.constant 0 : index
    %6 = vector.load %arg5[%5, %c0] : memref<24x160xf32, #tpu.memory_space<vmem>>, vector<24x160xf32>
    %7 = vector.extract_strided_slice %6 {offsets = [0, 0], sizes = [24, 128], strides = [1, 1]} : vector<24x160xf32> to vector<24x128xf32>
    %c0_1 = arith.constant 0 : index
    %c0_2 = arith.constant 0 : index
    %c0_3 = arith.constant 0 : index
    %8 = vector.load %arg6[%c0_1, %c0_2, %c0_3] : memref<5x24x128xf32, #tpu.memory_space<vmem>>, vector<1x24x128xf32>
    %9 = vector.shape_cast %8 : vector<1x24x128xf32> to vector<24x128xf32>
    %10 = vector.shape_cast %7 : vector<24x128xf32> to vector<1x24x128xf32>
    tpu.vector_store %arg6[%c0_1, %c0_2, %c0_3], %10 {strides = array<i32>} : memref<5x24x128xf32, #tpu.memory_space<vmem>>, vector<1x24x128xf32>,
    %11 = vector.extract_strided_slice %6 {offsets = [0, 8], sizes = [24, 128], strides = [1, 1]} : vector<24x160xf32> to vector<24x128xf32>
    %c1 = arith.constant 1 : index
    %c0_4 = arith.constant 0 : index
    %c0_5 = arith.constant 0 : index
    %12 = vector.load %arg6[%c1, %c0_4, %c0_5] : memref<5x24x128xf32, #tpu.memory_space<vmem>>, vector<1x24x128xf32>
    %13 = vector.shape_cast %12 : vector<1x24x128xf32> to vector<24x128xf32>
    %14 = vector.shape_cast %11 : vector<24x128xf32> to vector<1x24x128xf32>
    tpu.vector_store %arg6[%c1, %c0_4, %c0_5], %14 {strides = array<i32>} : memref<5x24x128xf32, #tpu.memory_space<vmem>>, vector<1x24x128xf32>,
    %15 = vector.extract_strided_slice %6 {offsets = [0, 16], sizes = [24, 128], strides = [1, 1]} : vector<24x160xf32> to vector<24x128xf32>
    %c2 = arith.constant 2 : index
    %c0_6 = arith.constant 0 : index
    %c0_7 = arith.constant 0 : index
    %16 = vector.load %arg6[%c2, %c0_6, %c0_7] : memref<5x24x128xf32, #tpu.memory_space<vmem>>, vector<1x24x128xf32>
    %17 = vector.shape_cast %16 : vector<1x24x128xf32> to vector<24x128xf32>
    %18 = vector.shape_cast %15 : vector<24x128xf32> to vector<1x24x128xf32>
    tpu.vector_store %arg6[%c2, %c0_6, %c0_7], %18 {strides = array<i32>} : memref<5x24x128xf32, #tpu.memory_space<vmem>>, vector<1x24x128xf32>,
    %19 = vector.extract_strided_slice %6 {offsets = [0, 24], sizes = [24, 128], strides = [1, 1]} : vector<24x160xf32> to vector<24x128xf32>
    %c3 = arith.constant 3 : index
    %c0_8 = arith.constant 0 : index
    %c0_9 = arith.constant 0 : index
    %20 = vector.load %arg6[%c3, %c0_8, %c0_9] : memref<5x24x128xf32, #tpu.memory_space<vmem>>, vector<1x24x128xf32>
    %21 = vector.shape_cast %20 : vector<1x24x128xf32> to vector<24x128xf32>
    %22 = vector.shape_cast %19 : vector<24x128xf32> to vector<1x24x128xf32>
    tpu.vector_store %arg6[%c3, %c0_8, %c0_9], %22 {strides = array<i32>} : memref<5x24x128xf32, #tpu.memory_space<vmem>>, vector<1x24x128xf32>,
    %23 = vector.extract_strided_slice %6 {offsets = [0, 32], sizes = [24, 128], strides = [1, 1]} : vector<24x160xf32> to vector<24x128xf32>
    %c4 = arith.constant 4 : index
    %c0_10 = arith.constant 0 : index
    %c0_11 = arith.constant 0 : index
    %24 = vector.load %arg6[%c4, %c0_10, %c0_11] : memref<5x24x128xf32, #tpu.memory_space<vmem>>, vector<1x24x128xf32>
    %25 = vector.shape_cast %24 : vector<1x24x128xf32> to vector<24x128xf32>
    %26 = vector.shape_cast %23 : vector<24x128xf32> to vector<1x24x128xf32>
    tpu.vector_store %arg6[%c4, %c0_10, %c0_11], %26 {strides = array<i32>} : memref<5x24x128xf32, #tpu.memory_space<vmem>>, vector<1x24x128xf32>,
    %cst = arith.constant 0.000000e+00 : f32
    %27 = vector.broadcast %cst : f32 to vector<16x128xf32>
    %c0_12 = arith.constant 0 : index
    %c0_13 = arith.constant 0 : index
    %c0_14 = arith.constant 0 : index
    %28 = vector.load %arg6[%c0_12, %c0_13, %c0_14] : memref<5x24x128xf32, #tpu.memory_space<vmem>>, vector<1x16x128xf32>
    %29 = vector.shape_cast %28 : vector<1x16x128xf32> to vector<16x128xf32>
    %c0_15 = arith.constant 0 : index
    %c0_16 = arith.constant 0 : index
    %c0_17 = arith.constant 0 : index
    %30 = vector.load %arg3[%c0_15, %c0_16, %c0_17] : memref<5x5x128xf32, #tpu.memory_space<vmem>>, vector<1x1x128xf32>
    %31 = vector.shape_cast %30 : vector<1x1x128xf32> to vector<128xf32>
    %32 = vector.shape_cast %31 : vector<128xf32> to vector<1x128xf32>
    %33 = vector.broadcast %32 : vector<1x128xf32> to vector<16x128xf32>
    %34 = arith.mulf %29, %33 : vector<16x128xf32>
    %35 = arith.addf %27, %34 : vector<16x128xf32>
    %c1_18 = arith.constant 1 : index
    %c0_19 = arith.constant 0 : index
    %c0_20 = arith.constant 0 : index
    %36 = vector.load %arg6[%c1_18, %c0_19, %c0_20] : memref<5x24x128xf32, #tpu.memory_space<vmem>>, vector<1x16x128xf32>
    %37 = vector.shape_cast %36 : vector<1x16x128xf32> to vector<16x128xf32>
    %c0_21 = arith.constant 0 : index
    %c1_22 = arith.constant 1 : index
    %c0_23 = arith.constant 0 : index
    %38 = vector.load %arg3[%c0_21, %c1_22, %c0_23] : memref<5x5x128xf32, #tpu.memory_space<vmem>>, vector<1x1x128xf32>
    %39 = vector.shape_cast %38 : vector<1x1x128xf32> to vector<128xf32>
    %40 = vector.shape_cast %39 : vector<128xf32> to vector<1x128xf32>
    %41 = vector.broadcast %40 : vector<1x128xf32> to vector<16x128xf32>
    %42 = arith.mulf %37, %41 : vector<16x128xf32>
    %43 = arith.addf %35, %42 : vector<16x128xf32>
    %c2_24 = arith.constant 2 : index
    %c0_25 = arith.constant 0 : index
    %c0_26 = arith.constant 0 : index
    %44 = vector.load %arg6[%c2_24, %c0_25, %c0_26] : memref<5x24x128xf32, #tpu.memory_space<vmem>>, vector<1x16x128xf32>
    %45 = vector.shape_cast %44 : vector<1x16x128xf32> to vector<16x128xf32>
    %c0_27 = arith.constant 0 : index
    %c2_28 = arith.constant 2 : index
    %c0_29 = arith.constant 0 : index
    %46 = vector.load %arg3[%c0_27, %c2_28, %c0_29] : memref<5x5x128xf32, #tpu.memory_space<vmem>>, vector<1x1x128xf32>
    %47 = vector.shape_cast %46 : vector<1x1x128xf32> to vector<128xf32>
    %48 = vector.shape_cast %47 : vector<128xf32> to vector<1x128xf32>
    %49 = vector.broadcast %48 : vector<1x128xf32> to vector<16x128xf32>
    %50 = arith.mulf %45, %49 : vector<16x128xf32>
    %51 = arith.addf %43, %50 : vector<16x128xf32>
    %c3_30 = arith.constant 3 : index
    %c0_31 = arith.constant 0 : index
    %c0_32 = arith.constant 0 : index
    %52 = vector.load %arg6[%c3_30, %c0_31, %c0_32] : memref<5x24x128xf32, #tpu.memory_space<vmem>>, vector<1x16x128xf32>
    %53 = vector.shape_cast %52 : vector<1x16x128xf32> to vector<16x128xf32>
    %c0_33 = arith.constant 0 : index
    %c3_34 = arith.constant 3 : index
    %c0_35 = arith.constant 0 : index
    %54 = vector.load %arg3[%c0_33, %c3_34, %c0_35] : memref<5x5x128xf32, #tpu.memory_space<vmem>>, vector<1x1x128xf32>
    %55 = vector.shape_cast %54 : vector<1x1x128xf32> to vector<128xf32>
    %56 = vector.shape_cast %55 : vector<128xf32> to vector<1x128xf32>
    %57 = vector.broadcast %56 : vector<1x128xf32> to vector<16x128xf32>
    %58 = arith.mulf %53, %57 : vector<16x128xf32>
    %59 = arith.addf %51, %58 : vector<16x128xf32>
    %c4_36 = arith.constant 4 : index
    %c0_37 = arith.constant 0 : index
    %c0_38 = arith.constant 0 : index
    %60 = vector.load %arg6[%c4_36, %c0_37, %c0_38] : memref<5x24x128xf32, #tpu.memory_space<vmem>>, vector<1x16x128xf32>
    %61 = vector.shape_cast %60 : vector<1x16x128xf32> to vector<16x128xf32>
    %c0_39 = arith.constant 0 : index
    %c4_40 = arith.constant 4 : index
    %c0_41 = arith.constant 0 : index
    %62 = vector.load %arg3[%c0_39, %c4_40, %c0_41] : memref<5x5x128xf32, #tpu.memory_space<vmem>>, vector<1x1x128xf32>
    %63 = vector.shape_cast %62 : vector<1x1x128xf32> to vector<128xf32>
    %64 = vector.shape_cast %63 : vector<128xf32> to vector<1x128xf32>
    %65 = vector.broadcast %64 : vector<1x128xf32> to vector<16x128xf32>
    %66 = arith.mulf %61, %65 : vector<16x128xf32>
    %67 = arith.addf %59, %66 : vector<16x128xf32>
    %c0_42 = arith.constant 0 : index
    %c1_43 = arith.constant 1 : index
    %c0_44 = arith.constant 0 : index
    %68 = vector.load %arg6[%c0_42, %c1_43, %c0_44] : memref<5x24x128xf32, #tpu.memory_space<vmem>>, vector<1x16x128xf32>
    %69 = vector.shape_cast %68 : vector<1x16x128xf32> to vector<16x128xf32>
    %c1_45 = arith.constant 1 : index
    %c0_46 = arith.constant 0 : index
    %c0_47 = arith.constant 0 : index
    %70 = vector.load %arg3[%c1_45, %c0_46, %c0_47] : memref<5x5x128xf32, #tpu.memory_space<vmem>>, vector<1x1x128xf32>
    %71 = vector.shape_cast %70 : vector<1x1x128xf32> to vector<128xf32>
    %72 = vector.shape_cast %71 : vector<128xf32> to vector<1x128xf32>
    %73 = vector.broadcast %72 : vector<1x128xf32> to vector<16x128xf32>
    %74 = arith.mulf %69, %73 : vector<16x128xf32>
    %75 = arith.addf %67, %74 : vector<16x128xf32>
    %c1_48 = arith.constant 1 : index
    %c1_49 = arith.constant 1 : index
    %c0_50 = arith.constant 0 : index
    %76 = vector.load %arg6[%c1_48, %c1_49, %c0_50] : memref<5x24x128xf32, #tpu.memory_space<vmem>>, vector<1x16x128xf32>
    %77 = vector.shape_cast %76 : vector<1x16x128xf32> to vector<16x128xf32>
    %c1_51 = arith.constant 1 : index
    %c1_52 = arith.constant 1 : index
    %c0_53 = arith.constant 0 : index
    %78 = vector.load %arg3[%c1_51, %c1_52, %c0_53] : memref<5x5x128xf32, #tpu.memory_space<vmem>>, vector<1x1x128xf32>
    %79 = vector.shape_cast %78 : vector<1x1x128xf32> to vector<128xf32>
    %80 = vector.shape_cast %79 : vector<128xf32> to vector<1x128xf32>
    %81 = vector.broadcast %80 : vector<1x128xf32> to vector<16x128xf32>
    %82 = arith.mulf %77, %81 : vector<16x128xf32>
    %83 = arith.addf %75, %82 : vector<16x128xf32>
    %c2_54 = arith.constant 2 : index
    %c1_55 = arith.constant 1 : index
    %c0_56 = arith.constant 0 : index
    %84 = vector.load %arg6[%c2_54, %c1_55, %c0_56] : memref<5x24x128xf32, #tpu.memory_space<vmem>>, vector<1x16x128xf32>
    %85 = vector.shape_cast %84 : vector<1x16x128xf32> to vector<16x128xf32>
    %c1_57 = arith.constant 1 : index
    %c2_58 = arith.constant 2 : index
    %c0_59 = arith.constant 0 : index
    %86 = vector.load %arg3[%c1_57, %c2_58, %c0_59] : memref<5x5x128xf32, #tpu.memory_space<vmem>>, vector<1x1x128xf32>
    %87 = vector.shape_cast %86 : vector<1x1x128xf32> to vector<128xf32>
    %88 = vector.shape_cast %87 : vector<128xf32> to vector<1x128xf32>
    %89 = vector.broadcast %88 : vector<1x128xf32> to vector<16x128xf32>
    %90 = arith.mulf %85, %89 : vector<16x128xf32>
    %91 = arith.addf %83, %90 : vector<16x128xf32>
    %c3_60 = arith.constant 3 : index
    %c1_61 = arith.constant 1 : index
    %c0_62 = arith.constant 0 : index
    %92 = vector.load %arg6[%c3_60, %c1_61, %c0_62] : memref<5x24x128xf32, #tpu.memory_space<vmem>>, vector<1x16x128xf32>
    %93 = vector.shape_cast %92 : vector<1x16x128xf32> to vector<16x128xf32>
    %c1_63 = arith.constant 1 : index
    %c3_64 = arith.constant 3 : index
    %c0_65 = arith.constant 0 : index
    %94 = vector.load %arg3[%c1_63, %c3_64, %c0_65] : memref<5x5x128xf32, #tpu.memory_space<vmem>>, vector<1x1x128xf32>
    %95 = vector.shape_cast %94 : vector<1x1x128xf32> to vector<128xf32>
    %96 = vector.shape_cast %95 : vector<128xf32> to vector<1x128xf32>
    %97 = vector.broadcast %96 : vector<1x128xf32> to vector<16x128xf32>
    %98 = arith.mulf %93, %97 : vector<16x128xf32>
    %99 = arith.addf %91, %98 : vector<16x128xf32>
    %c4_66 = arith.constant 4 : index
    %c1_67 = arith.constant 1 : index
    %c0_68 = arith.constant 0 : index
    %100 = vector.load %arg6[%c4_66, %c1_67, %c0_68] : memref<5x24x128xf32, #tpu.memory_space<vmem>>, vector<1x16x128xf32>
    %101 = vector.shape_cast %100 : vector<1x16x128xf32> to vector<16x128xf32>
    %c1_69 = arith.constant 1 : index
    %c4_70 = arith.constant 4 : index
    %c0_71 = arith.constant 0 : index
    %102 = vector.load %arg3[%c1_69, %c4_70, %c0_71] : memref<5x5x128xf32, #tpu.memory_space<vmem>>, vector<1x1x128xf32>
    %103 = vector.shape_cast %102 : vector<1x1x128xf32> to vector<128xf32>
    %104 = vector.shape_cast %103 : vector<128xf32> to vector<1x128xf32>
    %105 = vector.broadcast %104 : vector<1x128xf32> to vector<16x128xf32>
    %106 = arith.mulf %101, %105 : vector<16x128xf32>
    %107 = arith.addf %99, %106 : vector<16x128xf32>
    %c0_72 = arith.constant 0 : index
    %c2_73 = arith.constant 2 : index
    %c0_74 = arith.constant 0 : index
    %108 = vector.load %arg6[%c0_72, %c2_73, %c0_74] : memref<5x24x128xf32, #tpu.memory_space<vmem>>, vector<1x16x128xf32>
    %109 = vector.shape_cast %108 : vector<1x16x128xf32> to vector<16x128xf32>
    %c2_75 = arith.constant 2 : index
    %c0_76 = arith.constant 0 : index
    %c0_77 = arith.constant 0 : index
    %110 = vector.load %arg3[%c2_75, %c0_76, %c0_77] : memref<5x5x128xf32, #tpu.memory_space<vmem>>, vector<1x1x128xf32>
    %111 = vector.shape_cast %110 : vector<1x1x128xf32> to vector<128xf32>
    %112 = vector.shape_cast %111 : vector<128xf32> to vector<1x128xf32>
    %113 = vector.broadcast %112 : vector<1x128xf32> to vector<16x128xf32>
    %114 = arith.mulf %109, %113 : vector<16x128xf32>
    %115 = arith.addf %107, %114 : vector<16x128xf32>
    %c1_78 = arith.constant 1 : index
    %c2_79 = arith.constant 2 : index
    %c0_80 = arith.constant 0 : index
    %116 = vector.load %arg6[%c1_78, %c2_79, %c0_80] : memref<5x24x128xf32, #tpu.memory_space<vmem>>, vector<1x16x128xf32>
    %117 = vector.shape_cast %116 : vector<1x16x128xf32> to vector<16x128xf32>
    %c2_81 = arith.constant 2 : index
    %c1_82 = arith.constant 1 : index
    %c0_83 = arith.constant 0 : index
    %118 = vector.load %arg3[%c2_81, %c1_82, %c0_83] : memref<5x5x128xf32, #tpu.memory_space<vmem>>, vector<1x1x128xf32>
    %119 = vector.shape_cast %118 : vector<1x1x128xf32> to vector<128xf32>
    %120 = vector.shape_cast %119 : vector<128xf32> to vector<1x128xf32>
    %121 = vector.broadcast %120 : vector<1x128xf32> to vector<16x128xf32>
    %122 = arith.mulf %117, %121 : vector<16x128xf32>
    %123 = arith.addf %115, %122 : vector<16x128xf32>
    %c2_84 = arith.constant 2 : index
    %c2_85 = arith.constant 2 : index
    %c0_86 = arith.constant 0 : index
    %124 = vector.load %arg6[%c2_84, %c2_85, %c0_86] : memref<5x24x128xf32, #tpu.memory_space<vmem>>, vector<1x16x128xf32>
    %125 = vector.shape_cast %124 : vector<1x16x128xf32> to vector<16x128xf32>
    %c2_87 = arith.constant 2 : index
    %c2_88 = arith.constant 2 : index
    %c0_89 = arith.constant 0 : index
    %126 = vector.load %arg3[%c2_87, %c2_88, %c0_89] : memref<5x5x128xf32, #tpu.memory_space<vmem>>, vector<1x1x128xf32>
    %127 = vector.shape_cast %126 : vector<1x1x128xf32> to vector<128xf32>
    %128 = vector.shape_cast %127 : vector<128xf32> to vector<1x128xf32>
    %129 = vector.broadcast %128 : vector<1x128xf32> to vector<16x128xf32>
    %130 = arith.mulf %125, %129 : vector<16x128xf32>
    %131 = arith.addf %123, %130 : vector<16x128xf32>
    %c3_90 = arith.constant 3 : index
    %c2_91 = arith.constant 2 : index
    %c0_92 = arith.constant 0 : index
    %132 = vector.load %arg6[%c3_90, %c2_91, %c0_92] : memref<5x24x128xf32, #tpu.memory_space<vmem>>, vector<1x16x128xf32>
    %133 = vector.shape_cast %132 : vector<1x16x128xf32> to vector<16x128xf32>
    %c2_93 = arith.constant 2 : index
    %c3_94 = arith.constant 3 : index
    %c0_95 = arith.constant 0 : index
    %134 = vector.load %arg3[%c2_93, %c3_94, %c0_95] : memref<5x5x128xf32, #tpu.memory_space<vmem>>, vector<1x1x128xf32>
    %135 = vector.shape_cast %134 : vector<1x1x128xf32> to vector<128xf32>
    %136 = vector.shape_cast %135 : vector<128xf32> to vector<1x128xf32>
    %137 = vector.broadcast %136 : vector<1x128xf32> to vector<16x128xf32>
    %138 = arith.mulf %133, %137 : vector<16x128xf32>
    %139 = arith.addf %131, %138 : vector<16x128xf32>
    %c4_96 = arith.constant 4 : index
    %c2_97 = arith.constant 2 : index
    %c0_98 = arith.constant 0 : index
    %140 = vector.load %arg6[%c4_96, %c2_97, %c0_98] : memref<5x24x128xf32, #tpu.memory_space<vmem>>, vector<1x16x128xf32>
    %141 = vector.shape_cast %140 : vector<1x16x128xf32> to vector<16x128xf32>
    %c2_99 = arith.constant 2 : index
    %c4_100 = arith.constant 4 : index
    %c0_101 = arith.constant 0 : index
    %142 = vector.load %arg3[%c2_99, %c4_100, %c0_101] : memref<5x5x128xf32, #tpu.memory_space<vmem>>, vector<1x1x128xf32>
    %143 = vector.shape_cast %142 : vector<1x1x128xf32> to vector<128xf32>
    %144 = vector.shape_cast %143 : vector<128xf32> to vector<1x128xf32>
    %145 = vector.broadcast %144 : vector<1x128xf32> to vector<16x128xf32>
    %146 = arith.mulf %141, %145 : vector<16x128xf32>
    %147 = arith.addf %139, %146 : vector<16x128xf32>
    %c0_102 = arith.constant 0 : index
    %c3_103 = arith.constant 3 : index
    %c0_104 = arith.constant 0 : index
    %148 = vector.load %arg6[%c0_102, %c3_103, %c0_104] : memref<5x24x128xf32, #tpu.memory_space<vmem>>, vector<1x16x128xf32>
    %149 = vector.shape_cast %148 : vector<1x16x128xf32> to vector<16x128xf32>
    %c3_105 = arith.constant 3 : index
    %c0_106 = arith.constant 0 : index
    %c0_107 = arith.constant 0 : index
    %150 = vector.load %arg3[%c3_105, %c0_106, %c0_107] : memref<5x5x128xf32, #tpu.memory_space<vmem>>, vector<1x1x128xf32>
    %151 = vector.shape_cast %150 : vector<1x1x128xf32> to vector<128xf32>
    %152 = vector.shape_cast %151 : vector<128xf32> to vector<1x128xf32>
    %153 = vector.broadcast %152 : vector<1x128xf32> to vector<16x128xf32>
    %154 = arith.mulf %149, %153 : vector<16x128xf32>
    %155 = arith.addf %147, %154 : vector<16x128xf32>
    %c1_108 = arith.constant 1 : index
    %c3_109 = arith.constant 3 : index
    %c0_110 = arith.constant 0 : index
    %156 = vector.load %arg6[%c1_108, %c3_109, %c0_110] : memref<5x24x128xf32, #tpu.memory_space<vmem>>, vector<1x16x128xf32>
    %157 = vector.shape_cast %156 : vector<1x16x128xf32> to vector<16x128xf32>
    %c3_111 = arith.constant 3 : index
    %c1_112 = arith.constant 1 : index
    %c0_113 = arith.constant 0 : index
    %158 = vector.load %arg3[%c3_111, %c1_112, %c0_113] : memref<5x5x128xf32, #tpu.memory_space<vmem>>, vector<1x1x128xf32>
    %159 = vector.shape_cast %158 : vector<1x1x128xf32> to vector<128xf32>
    %160 = vector.shape_cast %159 : vector<128xf32> to vector<1x128xf32>
    %161 = vector.broadcast %160 : vector<1x128xf32> to vector<16x128xf32>
    %162 = arith.mulf %157, %161 : vector<16x128xf32>
    %163 = arith.addf %155, %162 : vector<16x128xf32>
    %c2_114 = arith.constant 2 : index
    %c3_115 = arith.constant 3 : index
    %c0_116 = arith.constant 0 : index
    %164 = vector.load %arg6[%c2_114, %c3_115, %c0_116] : memref<5x24x128xf32, #tpu.memory_space<vmem>>, vector<1x16x128xf32>
    %165 = vector.shape_cast %164 : vector<1x16x128xf32> to vector<16x128xf32>
    %c3_117 = arith.constant 3 : index
    %c2_118 = arith.constant 2 : index
    %c0_119 = arith.constant 0 : index
    %166 = vector.load %arg3[%c3_117, %c2_118, %c0_119] : memref<5x5x128xf32, #tpu.memory_space<vmem>>, vector<1x1x128xf32>
    %167 = vector.shape_cast %166 : vector<1x1x128xf32> to vector<128xf32>
    %168 = vector.shape_cast %167 : vector<128xf32> to vector<1x128xf32>
    %169 = vector.broadcast %168 : vector<1x128xf32> to vector<16x128xf32>
    %170 = arith.mulf %165, %169 : vector<16x128xf32>
    %171 = arith.addf %163, %170 : vector<16x128xf32>
    %c3_120 = arith.constant 3 : index
    %c3_121 = arith.constant 3 : index
    %c0_122 = arith.constant 0 : index
    %172 = vector.load %arg6[%c3_120, %c3_121, %c0_122] : memref<5x24x128xf32, #tpu.memory_space<vmem>>, vector<1x16x128xf32>
    %173 = vector.shape_cast %172 : vector<1x16x128xf32> to vector<16x128xf32>
    %c3_123 = arith.constant 3 : index
    %c3_124 = arith.constant 3 : index
    %c0_125 = arith.constant 0 : index
    %174 = vector.load %arg3[%c3_123, %c3_124, %c0_125] : memref<5x5x128xf32, #tpu.memory_space<vmem>>, vector<1x1x128xf32>
    %175 = vector.shape_cast %174 : vector<1x1x128xf32> to vector<128xf32>
    %176 = vector.shape_cast %175 : vector<128xf32> to vector<1x128xf32>
    %177 = vector.broadcast %176 : vector<1x128xf32> to vector<16x128xf32>
    %178 = arith.mulf %173, %177 : vector<16x128xf32>
    %179 = arith.addf %171, %178 : vector<16x128xf32>
    %c4_126 = arith.constant 4 : index
    %c3_127 = arith.constant 3 : index
    %c0_128 = arith.constant 0 : index
    %180 = vector.load %arg6[%c4_126, %c3_127, %c0_128] : memref<5x24x128xf32, #tpu.memory_space<vmem>>, vector<1x16x128xf32>
    %181 = vector.shape_cast %180 : vector<1x16x128xf32> to vector<16x128xf32>
    %c3_129 = arith.constant 3 : index
    %c4_130 = arith.constant 4 : index
    %c0_131 = arith.constant 0 : index
    %182 = vector.load %arg3[%c3_129, %c4_130, %c0_131] : memref<5x5x128xf32, #tpu.memory_space<vmem>>, vector<1x1x128xf32>
    %183 = vector.shape_cast %182 : vector<1x1x128xf32> to vector<128xf32>
    %184 = vector.shape_cast %183 : vector<128xf32> to vector<1x128xf32>
    %185 = vector.broadcast %184 : vector<1x128xf32> to vector<16x128xf32>
    %186 = arith.mulf %181, %185 : vector<16x128xf32>
    %187 = arith.addf %179, %186 : vector<16x128xf32>
    %c0_132 = arith.constant 0 : index
    %c4_133 = arith.constant 4 : index
    %c0_134 = arith.constant 0 : index
    %188 = vector.load %arg6[%c0_132, %c4_133, %c0_134] : memref<5x24x128xf32, #tpu.memory_space<vmem>>, vector<1x16x128xf32>
    %189 = vector.shape_cast %188 : vector<1x16x128xf32> to vector<16x128xf32>
    %c4_135 = arith.constant 4 : index
    %c0_136 = arith.constant 0 : index
    %c0_137 = arith.constant 0 : index
    %190 = vector.load %arg3[%c4_135, %c0_136, %c0_137] : memref<5x5x128xf32, #tpu.memory_space<vmem>>, vector<1x1x128xf32>
    %191 = vector.shape_cast %190 : vector<1x1x128xf32> to vector<128xf32>
    %192 = vector.shape_cast %191 : vector<128xf32> to vector<1x128xf32>
    %193 = vector.broadcast %192 : vector<1x128xf32> to vector<16x128xf32>
    %194 = arith.mulf %189, %193 : vector<16x128xf32>
    %195 = arith.addf %187, %194 : vector<16x128xf32>
    %c1_138 = arith.constant 1 : index
    %c4_139 = arith.constant 4 : index
    %c0_140 = arith.constant 0 : index
    %196 = vector.load %arg6[%c1_138, %c4_139, %c0_140] : memref<5x24x128xf32, #tpu.memory_space<vmem>>, vector<1x16x128xf32>
    %197 = vector.shape_cast %196 : vector<1x16x128xf32> to vector<16x128xf32>
    %c4_141 = arith.constant 4 : index
    %c1_142 = arith.constant 1 : index
    %c0_143 = arith.constant 0 : index
    %198 = vector.load %arg3[%c4_141, %c1_142, %c0_143] : memref<5x5x128xf32, #tpu.memory_space<vmem>>, vector<1x1x128xf32>
    %199 = vector.shape_cast %198 : vector<1x1x128xf32> to vector<128xf32>
    %200 = vector.shape_cast %199 : vector<128xf32> to vector<1x128xf32>
    %201 = vector.broadcast %200 : vector<1x128xf32> to vector<16x128xf32>
    %202 = arith.mulf %197, %201 : vector<16x128xf32>
    %203 = arith.addf %195, %202 : vector<16x128xf32>
    %c2_144 = arith.constant 2 : index
    %c4_145 = arith.constant 4 : index
    %c0_146 = arith.constant 0 : index
    %204 = vector.load %arg6[%c2_144, %c4_145, %c0_146] : memref<5x24x128xf32, #tpu.memory_space<vmem>>, vector<1x16x128xf32>
    %205 = vector.shape_cast %204 : vector<1x16x128xf32> to vector<16x128xf32>
    %c4_147 = arith.constant 4 : index
    %c2_148 = arith.constant 2 : index
    %c0_149 = arith.constant 0 : index
    %206 = vector.load %arg3[%c4_147, %c2_148, %c0_149] : memref<5x5x128xf32, #tpu.memory_space<vmem>>, vector<1x1x128xf32>
    %207 = vector.shape_cast %206 : vector<1x1x128xf32> to vector<128xf32>
    %208 = vector.shape_cast %207 : vector<128xf32> to vector<1x128xf32>
    %209 = vector.broadcast %208 : vector<1x128xf32> to vector<16x128xf32>
    %210 = arith.mulf %205, %209 : vector<16x128xf32>
    %211 = arith.addf %203, %210 : vector<16x128xf32>
    %c3_150 = arith.constant 3 : index
    %c4_151 = arith.constant 4 : index
    %c0_152 = arith.constant 0 : index
    %212 = vector.load %arg6[%c3_150, %c4_151, %c0_152] : memref<5x24x128xf32, #tpu.memory_space<vmem>>, vector<1x16x128xf32>
    %213 = vector.shape_cast %212 : vector<1x16x128xf32> to vector<16x128xf32>
    %c4_153 = arith.constant 4 : index
    %c3_154 = arith.constant 3 : index
    %c0_155 = arith.constant 0 : index
    %214 = vector.load %arg3[%c4_153, %c3_154, %c0_155] : memref<5x5x128xf32, #tpu.memory_space<vmem>>, vector<1x1x128xf32>
    %215 = vector.shape_cast %214 : vector<1x1x128xf32> to vector<128xf32>
    %216 = vector.shape_cast %215 : vector<128xf32> to vector<1x128xf32>
    %217 = vector.broadcast %216 : vector<1x128xf32> to vector<16x128xf32>
    %218 = arith.mulf %213, %217 : vector<16x128xf32>
    %219 = arith.addf %211, %218 : vector<16x128xf32>
    %c4_156 = arith.constant 4 : index
    %c4_157 = arith.constant 4 : index
    %c0_158 = arith.constant 0 : index
    %220 = vector.load %arg6[%c4_156, %c4_157, %c0_158] : memref<5x24x128xf32, #tpu.memory_space<vmem>>, vector<1x16x128xf32>
    %221 = vector.shape_cast %220 : vector<1x16x128xf32> to vector<16x128xf32>
    %c4_159 = arith.constant 4 : index
    %c4_160 = arith.constant 4 : index
    %c0_161 = arith.constant 0 : index
    %222 = vector.load %arg3[%c4_159, %c4_160, %c0_161] : memref<5x5x128xf32, #tpu.memory_space<vmem>>, vector<1x1x128xf32>
    %223 = vector.shape_cast %222 : vector<1x1x128xf32> to vector<128xf32>
    %224 = vector.shape_cast %223 : vector<128xf32> to vector<1x128xf32>
    %225 = vector.broadcast %224 : vector<1x128xf32> to vector<16x128xf32>
    %226 = arith.mulf %221, %225 : vector<16x128xf32>
    %227 = arith.addf %219, %226 : vector<16x128xf32>
    %c0_162 = arith.constant 0 : index
    %c0_163 = arith.constant 0 : index
    %c0_164 = arith.constant 0 : index
    %228 = vector.load %arg4[%c0_162, %c0_163, %c0_164] : memref<1x16x128xf32, #tpu.memory_space<vmem>>, vector<1x16x128xf32>
    %229 = vector.shape_cast %228 : vector<1x16x128xf32> to vector<16x128xf32>
    %230 = vector.shape_cast %227 : vector<16x128xf32> to vector<1x16x128xf32>
    tpu.vector_store %arg4[%c0_162, %c0_163, %c0_164], %230 {strides = array<i32>} : memref<1x16x128xf32, #tpu.memory_space<vmem>>, vector<1x16x128xf32>,
    return
  }
  func.func @transform_0(%arg0: i32, %arg1: i32) -> (i32, i32, i32) {
    %c0_i32 = arith.constant 0 : i32
    %c0_i32_0 = arith.constant 0 : i32
    %c0_i32_1 = arith.constant 0 : i32
    return %arg0, %c0_i32, %c0_i32_0 : i32, i32, i32
  }
  func.func @transform_1(%arg0: i32, %arg1: i32) -> (i32, i32, i32) {
    %c0_i32 = arith.constant 0 : i32
    %c0_i32_0 = arith.constant 0 : i32
    %c0_i32_1 = arith.constant 0 : i32
    %c0_i32_2 = arith.constant 0 : i32
    return %c0_i32, %c0_i32_0, %c0_i32_1 : i32, i32, i32
  }
  func.func @transform_2(%arg0: i32, %arg1: i32) -> (i32, i32, i32) {
    %c0_i32 = arith.constant 0 : i32
    %c0_i32_0 = arith.constant 0 : i32
    return %arg0, %arg1, %c0_i32 : i32, i32, i32
  }
}

</mosaic_0001>

<bundles_post_ra>
// kernel: tpu_custom_call.1
= control target key start
LH: loop header
LB: loop body
LE: loop exit
PB: predicated region body
PF: predicated region fallthrough
CT: control target
= control target key end

     0   :  { %7 = vsyncpa [#allocation5], 0  ;;  %s1167_s0 = inlined_call_operand.hbm [shape: f32[2,16,128], index: 0, kind: input, shape index: {}]   ;;  %s1168_s1 = inlined_call_operand.hbm [shape: f32[5,5,128], index: 1, kind: input, shape index: {}]   ;;  %s1169_s2 = inlined_call_operand.hbm [shape: f32[2,16,128], index: 2, kind: output, shape index: {}]  }
   0x1   :  { %9 = vsyncpa [#allocation5 + $0x1], 0 }
   0x2   :  { %10 = vsyncpa [#allocation8], 0 }
   0x3   :  { %11 = vsyncpa [#allocation6], 0 }
   0x4   :  { %13 = vsyncpa [#allocation6 + $0x1], 0  ;;  %s970_s9 = smov 0   ;;  %s972_s10 = smov 0  }
   0x5   :  { %s974_s11 = smov 0   ;;  %s976_s12 = smov 0  }
   0x6   :  { %s978_s13 = smov 0   ;;  %s980_s14 = smov 0  }
   0x7 LB: > { %s669_s15 = sadd.s32 4294967295, %s942_s14   ;;  %s670_s16 = sadd.s32 4294967294, %s942_s14   ;;  %s942_s14 = sphi %s980_s14, %s19_s14   ;;  %s938_s13 = sphi %s978_s13, %s1181_s13   ;;  %s934_s12 = sphi %s976_s12, %s1180_s12   ;;  %s930_s11 = sphi %s974_s11, %s1179_s11   ;;  %s926_s10 = sphi %s972_s10, %s1178_s10   ;;  %s922_s9 = sphi %s970_s9, %s1177_s9  }
   0x8   : > { %p51_p0 = scmp.ne.s32.totalorder %s926_s10, %s922_s9  ;;  %p1004_p1 = scmp.eq.s32.totalorder %s669_s15, 0 }
   0x9   : > { %p1008_p2 = scmp.eq.s32.totalorder %s669_s15, 1  ;;  %p104_p3 = scmp.eq.s32.totalorder %s670_s16, 1 }
   0xa   : > { %p1014_p4 = por %p1004_p1, %p51_p0  ;;  %p671_p5 = scmp.ge.s32.totalorder %s942_s14, 1 }
   0xb   : > { %p1019_p6 = por %p104_p3, %p51_p0  ;;  %p111_p7 = scmp.lt.s32.totalorder %s942_s14, 3 }
   0xc   : > { %s122_s23 = sshll.u32 %s1168_s1, 4  ;;  %s944_s25 = smov [#allocation7]   ;;  %s123_s23 = int_to_ptr.hbm [resolvable:$true] %s122_s23 }
   0xd   : > { %p1027_p8 = pnand %p671_p5, %p111_p7  ;;  %s124_s26 = sshll.u32 %s944_s25, 4  ;;  %s125_s26 = int_to_ptr.vmem [resolvable:$true] %s124_s26 }
   0xe   : > { %p673_p11 = scmp.ge.s32.totalorder %s942_s14, 2  ;;  %s945_s27 = smov 128  }
   0xf   : > { %p696_p9 = pneg %p1027_p8  ;;  %s946_s28 = smov 8  }
  0x10   : > { %s31_s29 = sadd.s32 1, %s938_s13  ;;  %s38_s30 = sadd.s32 1, %s930_s11 }
  0x11   : > { %p697_p10 = pnand %p696_p9, %p1004_p1  ;;  %p33_p12 = scmp.ge.s32.totalorder %s31_s29, 2 }
  0x12   : > { %p45_p13 = scmp.ne.s32.totalorder %s930_s11, %s926_s10  ;;  %p46_p0 = scmp.eq.s32.totalorder %s942_s14, 0 }
  0x13   : > { %699 = dma.hbm_to_vmem [thread:$0]  (!%p697_p10), %s123_s23, 640, %s125_s26, [#allocation8], %s945_s27, %s945_s27, %s946_s28  }
  0x14   : > { %s1183_s29 = smov (%p33_p12, %s31_s29), 0  ;;  %p1046_p3 = por %p46_p0, %p45_p13 }
  0x15   : > { %p1052_p5 = por %p1008_p2, %p45_p13  ;;  %s35_s5 = ssub.s32 %s938_s13, %s1183_s29 }
  0x16   : > { %p709_p7 = scmp.lt.s32.totalorder %s942_s14, 2  ;;  %p36_p9 = scmp.eq.s32.totalorder %s35_s5, 0 }
  0x17   : > { %s138_s6 = sand.u32 1, %s930_s11   ;;  %s686_s15 = sshll.u32 %s938_s13, 4 }
  0x18   : > { %s674_s7 = sshll.u32 %s138_s6, 4  ;;  %s147_s22 = scalar_lea.hbm %s1167_s0, %s686_s15 }
  0x19   : > { %s1061_s8 = scalar_select %p36_p9, %s930_s11, %s38_s30  }
  0x1a   : > { %s142_s23 = scalar_lea.vmem [#allocation4], %s674_s7  ;;  %s148_s18 = sshll.u32 %s147_s22, 4  ;;  %s149_s18 = int_to_ptr.hbm [resolvable:$true] %s148_s18 }
  0x1b   : > { %s150_s25 = sshll.u32 %s142_s23, 4  ;;  %p701_p2 = pnand %p709_p7, %p1046_p3  ;;  %s151_s25 = int_to_ptr.vmem [resolvable:$true] %s150_s25 }
  0x1c   : > { %s139_s26 = scalar_lea.sflag [#allocation5], %s138_s6  ;;  %162 = sbr.rel (%p1027_p8) target bundleno = 380 (0x17c), region = 28 }
  0x1d   : > { %703 = dma.hbm_to_vmem [thread:$0]  (!%p701_p2), %s149_s18, 256, %s151_s25, %s139_s26, %s945_s27, %s945_s27, %s946_s28  }
  0x1e   : > { %s1075_s30 = sand.u32 (!%p1027_p8), 1, %s926_s10  }
  0x1f   : > { %s678_s5 = sshll.u32 (!%p1027_p8), %s1075_s30, 4  ;;  %s165_s7 = scalar_lea.sflag (!%p1027_p8), [#allocation5], %s1075_s30 }
  0x20   : > { %s168_s3 = scalar_lea.vmem (!%p1027_p8), [#allocation4], %s678_s5 }
  0x21   : > { %909 = dma.done.wait (%p1014_p4), %s165_s7, 256  }
  0x22   : > { %911 = vsyncadd (%p1014_p4), %s165_s7, 4294967040 }
  0x23   : > { %913 = dma.done.wait (%p1004_p1), [#allocation8], 640  }
  0x24   : > { %915 = vsyncadd (%p1004_p1), [#allocation8], 4294966656  ;;  %vm201_vm0 = vcmask 261120   ;;  %v947_v0 = vmov 0.0   ;;  %v207_v1 = vld [vmem:[%s168_s3] sm:$0xff]  ;;  %v208_v2 = vld [vmem:[%s168_s3 + $0x8] sm:$0xff] }
  0x25   : > { %200 = vst [vmem:[#allocation2] sm:$0xff] %v947_v0  ;;  %vm211_vm1 = vcmask 1041408   ;;  %v212_v3 = vrot.slane %v207_v1, 6  ;;  %v213_v4 = vrot.slane %v208_v2, 6  ;;  %s948_s19 = smov 16   ;;  %vm224_vm2 = vcmask 1047682  }
  0x26   : > { %202 = vst.msk [vmem:[#allocation2 + $0x8] sm:$0xff] %vm201_vm0, %v947_v0  ;;  %vm226_vm3 = vcmask 130050   ;;  %vm232_vm4 = vcmask 1041536   ;;  %vm234_vm5 = vcmask 123904   ;;  %vm228_vm6 = vcmask 1047680   ;;  %s949_s17 = smov 120  }
  0x27   : > { %203 = vst [vmem:[#allocation2 + $0x10] sm:$0xff] %v947_v0  ;;  %215 = vrot.lane.b32.xlu0 %v212_v3, %s948_s19  ;;  %219 = vrot.lane.b32.xlu1 %v213_v4, %s948_s19  ;;  %v214_v5 = vsel %vm211_vm1, %v212_v3, %v213_v4  ;;  %vm230_vm7 = vcmask 130048   ;;  %s950_s24 = smov 104   ;;  %s951_s27 = smov 112   ;;  %vm269_vm8 = vcmask 982016   ;;  %vm315_vm9 = vcmask 850944  }
  0x28   : > { %204 = vst.msk [vmem:[#allocation2 + $0x18] sm:$0xff] %vm201_vm0, %v947_v0  ;;  %s952_s28 = smov 96   ;;  %vm292_vm10 = vcmask 916480   ;;  %vm338_vm11 = vcmask 785408   ;;  %v773_v33 = vld [vmem:[#allocation7 + $0x1] ss:$0 sm:$0xff] }
  0x29   : > { %205 = vst [vmem:[#allocation2 + $0x20] sm:$0xff] %v947_v0  ;;  %v772_v36 = vld [vmem:[#allocation7] ss:$0 sm:$0xff]  ;;  %v774_v37 = vld [vmem:[#allocation7 + $0x2] ss:$0 sm:$0xff]  ;;  %s194_s6 = scalar_lea.vmem [#allocation9], %s678_s5 }
  0x2a   : > { %206 = vst.msk [vmem:[#allocation2 + $0x28] sm:$0xff] %vm201_vm0, %v947_v0  ;;  %v771_v43 = vld [vmem:[#allocation7 + $0x3] ss:$0 sm:$0xff]  ;;  %v775_v45 = vld [vmem:[#allocation7 + $0x4] ss:$0 sm:$0xff]  ;;  %s687_s15 = sshll.u32 %s934_s12, 4 }
  0x2b   : > { %v776_v52 = vld [vmem:[#allocation7 + $0x8] ss:$0 sm:$0xff]  ;;  %v777_v53 = vld [vmem:[#allocation7 + $0x9] ss:$0 sm:$0xff]  ;;  %v780_v62 = vld [vmem:[#allocation7 + $0xa] ss:$0 sm:$0xff]  ;;  %s569_s22 = scalar_lea.hbm %s1169_s2, %s687_s15 }
  0x2c   : > { %s570_s23 = sshll.u32 %s194_s6, 4  ;;  %s572_s25 = sshll.u32 %s569_s22, 4  ;;  %s571_s23 = int_to_ptr.vmem [resolvable:$true] %s570_s23  ;;  %s573_s25 = int_to_ptr.hbm [resolvable:$true] %s572_s25 }
  0x2d   : > { %s556_s12 = scalar_lea.sflag [#allocation6], %s1075_s30  ;;  %s870_s18 = sshra.s32 %s573_s25, 4  ;;  %s871_s18 = int_to_ptr.hbm [resolvable:$true] %s870_s18 }
  0x2e   : > { %s872_s26 = scalar_lea.hbm %s871_s18, 16  ;;  %s876_s3 = scalar_lea.hbm %s1169_s2, 32 }
  0x2f   : > { %217 = vrot.lane.b32.xlu0 %v214_v5, %s948_s19  ;;  %p873_p1 = scmp.ne.s32.totalorder %s871_s18, %s872_s26  ;;  %p877_p10 = scmp.lt.s32.totalorder %s871_s18, %s1169_s2 }
  0x30   : > { %p878_p12 = scmp.lt.s32.totalorder %s876_s3, %s872_s26 }
  0x31   : > { %p874_p4 = pnand %p873_p1, %p1052_p5 }
  0x32   : > { %p879_p13 = por %p878_p12, %p877_p10 }
  0x33   : > { %p875_p8 = pneg %p874_p4 }
  0x35   : > { %p880_p0 = pnand %p879_p13, %p875_p8 }
  0x99   : > { %v216_v6 = vpop.permute.xlu0 %215  ;;  %v220_v7 = vpop.permute.xlu1 %219 }
  0x9a   : > { %225 = vst.msk [vmem:[#allocation2] sm:$0xfc] %vm224_vm2, %v216_v6 }
  0x9b   : > { %227 = vst.msk [vmem:[#allocation2 + $0x8] sm:$0xfc] %vm226_vm3, %v216_v6 }
  0x9c   : > { %233 = vst.msk [vmem:[#allocation2 + $0x20] sm:$0x3] %vm232_vm4, %v220_v7 }
  0x9d   : > { %235 = vst.msk [vmem:[#allocation2 + $0x28] sm:$0x3] %vm234_vm5, %v220_v7 }
  0xa1   : > { %v218_v8 = vpop.permute.xlu0 %217  ;;  %v1089_v9 = vld [vmem:[#allocation2] sm:$0xff] }
  0xa2   : > { %229 = vst.msk [vmem:[#allocation2 + $0x10] sm:$0xff] %vm228_vm6, %v218_v8  ;;  %v243_v10 = vld [vmem:[#allocation2 + $0x8] sm:$0xff]  ;;  %257 = vrot.lane.b32.xlu1 %v1089_v9, %s949_s17  ;;  %v353_v39 = vmul.f32 %v772_v36, %v1089_v9 }
  0xa3   : > { %231 = vst.msk [vmem:[#allocation2 + $0x18] sm:$0xff] %vm230_vm7, %v218_v8  ;;  %305 = vrot.lane.b32.xlu0 %v243_v10, %s950_s24  ;;  %259 = vrot.lane.b32.xlu2 %v243_v10, %s949_s17  ;;  %v246_v11 = vld [vmem:[#allocation2 + $0x20] sm:$0xff] }
  0xa4   : > { %248 = vst [vmem:[#allocation3] sm:$0xff] %v1089_v9  ;;  %v247_v14 = vld [vmem:[#allocation2 + $0x28] sm:$0xff] }
  0xa5   : > { %250 = vst [vmem:[#allocation3 + $0x10] sm:$0xff] %v246_v11 }
  0xa9   : > { %v1094_v12 = vld [vmem:[#allocation2 + $0x10] sm:$0xff] }
  0xaa   : > { %280 = vrot.lane.b32.xlu1 %v1089_v9, %s951_s27  ;;  %249 = vst [vmem:[#allocation3 + $0x8] sm:$0xff] %v1094_v12  ;;  %v245_v13 = vld [vmem:[#allocation2 + $0x18] sm:$0xff]  ;;  %v354_v61 = vmul.f32 %v772_v36, %v1094_v12 }
  0xab   : > { %282 = vrot.lane.b32.xlu2 %v243_v10, %s951_s27  ;;  %326 = vrot.lane.b32.xlu0 %v1089_v9, %s952_s28 }
  0xb1   : > { %v389_v56 = vld [vmem:[#allocation3 + $0x1] sm:$0xff] }
  0xb2   : > { %328 = vrot.lane.b32.xlu1 %v243_v10, %s952_s28  ;;  %v394_v3 = vmul.f32 %v776_v52, %v389_v56  ;;  %v785_v10 = vld [vmem:[#allocation7 + $0xb] ss:$0 sm:$0xff]  ;;  %v788_v56 = vld [vmem:[#allocation7 + $0x18] ss:$0 sm:$0xff] }
  0xb3   : > { %288 = vrot.lane.b32.xlu0 %v246_v11, %s951_s27  ;;  %303 = vrot.lane.b32.xlu2 %v1089_v9, %s950_s24 }
  0xba   : > { %265 = vrot.lane.b32.xlu1 %v246_v11, %s949_s17 }
  0xbb   : > { %263 = vrot.lane.b32.xlu0 %v245_v13, %s949_s17  ;;  %267 = vrot.lane.b32.xlu2 %v247_v14, %s949_s17 }
  0xc2   : > { %286 = vrot.lane.b32.xlu1 %v245_v13, %s951_s27 }
  0xc3   : > { %284 = vrot.lane.b32.xlu0 %v1094_v12, %s951_s27  ;;  %261 = vrot.lane.b32.xlu2 %v1094_v12, %s949_s17 }
  0xca   : > { %307 = vrot.lane.b32.xlu1 %v1094_v12, %s950_s24 }
  0xcb   : > { %332 = vrot.lane.b32.xlu0 %v245_v13, %s952_s28  ;;  %309 = vrot.lane.b32.xlu2 %v245_v13, %s950_s24  ;;  %v1120_v13 = vld [vmem:[#allocation7 + $0xc] ss:$0 sm:$0xff] }
  0xd2   : > { %290 = vrot.lane.b32.xlu1 %v247_v14, %s951_s27 }
  0xd3   : > { %313 = vrot.lane.b32.xlu0 %v247_v14, %s950_s24  ;;  %330 = vrot.lane.b32.xlu2 %v1094_v12, %s952_s28 }
  0xda   : > { %334 = vrot.lane.b32.xlu1 %v246_v11, %s952_s28 }
  0xdb   : > { %311 = vrot.lane.b32.xlu2 %v246_v11, %s950_s24 }
  0xe3   : > { %336 = vrot.lane.b32.xlu2 %v247_v14, %s952_s28 }
  0xfd   : > { %v260_v15 = vpop.permute.xlu2 %259 }
 0x105   : > { %v283_v16 = vpop.permute.xlu2 %282 }
 0x10d   : > { %v304_v17 = vpop.permute.xlu2 %303 }
 0x114   : > { %v258_v18 = vpop.permute.xlu1 %257 }
 0x115   : > { %v306_v19 = vpop.permute.xlu0 %305  ;;  %v270_v20 = vsel %vm269_vm8, %v258_v18, %v260_v15  ;;  %v268_v22 = vpop.permute.xlu2 %267 }
 0x116   : > { %v316_v21 = vsel %vm315_vm9, %v304_v17, %v306_v19  ;;  %277 = vst [vmem:[#allocation3 + $0x18] sm:$0xff] %v270_v20  ;;  %v361_v38 = vmul.f32 %v773_v33, %v270_v20 }
 0x117   : > { %323 = vst [vmem:[#allocation3 + $0x48] sm:$0xff] %v316_v21  ;;  %v377_v49 = vmul.f32 %v771_v43, %v316_v21  ;;  %v786_v21 = vld [vmem:[#allocation7 + $0x10] ss:$0 sm:$0xff] }
 0x118   : > { %v363_v44 = vadd.f32 %v361_v38, %v353_v39  ;;  %v787_v39 = vld [vmem:[#allocation7 + $0x13] ss:$0 sm:$0xff] }
 0x11c   : > { %v281_v23 = vpop.permute.xlu1 %280 }
 0x11d   : > { %v327_v24 = vpop.permute.xlu0 %326  ;;  %v293_v25 = vsel %vm292_vm10, %v281_v23, %v283_v16  ;;  %v262_v26 = vpop.permute.xlu2 %261 }
 0x11e   : > { %300 = vst [vmem:[#allocation3 + $0x30] sm:$0xff] %v293_v25  ;;  %v369_v40 = vmul.f32 %v774_v37, %v293_v25  ;;  %v430_v25 = vld [vmem:[#allocation3 + $0x2] sm:$0xff] }
 0x120   : > { %v371_v47 = vadd.f32 %v369_v40, %v363_v44 }
 0x122   : > { %v379_v51 = vadd.f32 %v377_v49, %v371_v47 }
 0x124   : > { %v329_v27 = vpop.permute.xlu1 %328 }
 0x125   : > { %v289_v28 = vpop.permute.xlu0 %288  ;;  %v339_v29 = vsel %vm338_vm11, %v327_v24, %v329_v27  ;;  %v310_v34 = vpop.permute.xlu2 %309  ;;  %v390_v24 = vld [vmem:[#allocation3 + $0x9] sm:$0xff] }
 0x126   : > { %346 = vst [vmem:[#allocation3 + $0x60] sm:$0xff] %v339_v29  ;;  %v385_v50 = vmul.f32 %v775_v45, %v339_v29 }
 0x128   : > { %v387_v60 = vadd.f32 %v385_v50, %v379_v51 }
 0x12a   : > { %v396_v6 = vadd.f32 %v394_v3, %v387_v60 }
 0x12c   : > { %v266_v30 = vpop.permute.xlu1 %265 }
 0x12d   : > { %v264_v31 = vpop.permute.xlu0 %263  ;;  %v272_v32 = vsel %vm269_vm8, %v266_v30, %v268_v22  ;;  %v331_v48 = vpop.permute.xlu2 %330 }
 0x12e   : > { %v271_v35 = vsel %vm269_vm8, %v262_v26, %v264_v31  ;;  %279 = vst [vmem:[#allocation3 + $0x28] sm:$0xff] %v272_v32  ;;  %v778_v26 = vld [vmem:[#allocation7 + $0x11] ss:$0 sm:$0xff]  ;;  %v781_v32 = vld [vmem:[#allocation7 + $0x12] ss:$0 sm:$0xff] }
 0x12f   : > { %278 = vst [vmem:[#allocation3 + $0x20] sm:$0xff] %v271_v35  ;;  %v362_v54 = vmul.f32 %v773_v33, %v271_v35 }
 0x131   : > { %v364_v2 = vadd.f32 %v362_v54, %v354_v61 }
 0x134   : > { %v287_v41 = vpop.permute.xlu1 %286 }
 0x135   : > { %v285_v42 = vpop.permute.xlu0 %284  ;;  %v312_v7 = vpop.permute.xlu2 %311 }
 0x136   : > { %v294_v46 = vsel %vm292_vm10, %v285_v42, %v287_v41  ;;  %v398_v57 = vld [vmem:[#allocation3 + $0x19] sm:$0xff]  ;;  %v399_v35 = vld [vmem:[#allocation3 + $0x21] sm:$0xff] }
 0x137   : > { %301 = vst [vmem:[#allocation3 + $0x38] sm:$0xff] %v294_v46  ;;  %v370_v63 = vmul.f32 %v774_v37, %v294_v46  ;;  %v402_v4 = vmul.f32 %v777_v53, %v398_v57  ;;  %v439_v31 = vld [vmem:[#allocation3 + $0x1a] sm:$0xff]  ;;  %v403_v46 = vmul.f32 %v777_v53, %v399_v35 }
 0x138   : > { %v443_v37 = vmul.f32 %v778_v26, %v439_v31 }
 0x139   : > { %v372_v8 = vadd.f32 %v370_v63, %v364_v2  ;;  %v404_v11 = vadd.f32 %v402_v4, %v396_v6 }
 0x13c   : > { %v308_v55 = vpop.permute.xlu1 %307 }
 0x13d   : > { %v333_v58 = vpop.permute.xlu0 %332  ;;  %v317_v59 = vsel %vm315_vm9, %v308_v55, %v310_v34  ;;  %v395_v34 = vmul.f32 %v776_v52, %v390_v24  ;;  %v337_v38 = vpop.permute.xlu2 %336 }
 0x13e   : > { %v340_v0 = vsel %vm338_vm11, %v331_v48, %v333_v58  ;;  %324 = vst [vmem:[#allocation3 + $0x50] sm:$0xff] %v317_v59  ;;  %v406_v1 = vld [vmem:[#allocation3 + $0x31] sm:$0xff]  ;;  %v378_v5 = vmul.f32 %v771_v43, %v317_v59  ;;  %v784_v48 = vld [vmem:[#allocation7 + $0x14] ss:$0 sm:$0xff]  ;;  %v471_v58 = vld [vmem:[#allocation3 + $0x3] sm:$0xff] }
 0x13f   : > { %347 = vst [vmem:[#allocation3 + $0x68] sm:$0xff] %v340_v0  ;;  %v410_v9 = vmul.f32 %v780_v62, %v406_v1  ;;  %v386_v19 = vmul.f32 %v775_v45, %v340_v0  ;;  %v447_v36 = vld [vmem:[#allocation3 + $0x32] sm:$0xff]  ;;  %v779_v59 = vld [vmem:[#allocation7 + $0x19] ss:$0 sm:$0xff]  ;;  %v480_v0 = vld [vmem:[#allocation3 + $0x1b] sm:$0xff]  ;;  %v476_v3 = vmul.f32 %v788_v56, %v471_v58 }
 0x140   : > { %v380_v12 = vadd.f32 %v378_v5, %v372_v8  ;;  %v451_v47 = vmul.f32 %v781_v32, %v447_v36  ;;  %v782_v1 = vld [vmem:[#allocation7 + $0x1a] ss:$0 sm:$0xff]  ;;  %v488_v4 = vld [vmem:[#allocation3 + $0x33] sm:$0xff]  ;;  %v431_v5 = vld [vmem:[#allocation3 + $0xa] sm:$0xff]  ;;  %v484_v6 = vmul.f32 %v779_v59, %v480_v0 }
 0x141   : > { %v412_v18 = vadd.f32 %v410_v9, %v404_v11  ;;  %v789_v11 = vld [vmem:[#allocation7 + $0x1b] ss:$0 sm:$0xff]  ;;  %v521_v36 = vld [vmem:[#allocation3 + $0x1c] sm:$0xff] }
 0x142   : > { %v388_v29 = vadd.f32 %v386_v19, %v380_v12  ;;  %v440_v12 = vld [vmem:[#allocation3 + $0x22] sm:$0xff]  ;;  %v790_v19 = vld [vmem:[#allocation7 + $0x1c] ss:$0 sm:$0xff] }
 0x144   : > { %v291_v14 = vpop.permute.xlu1 %290  ;;  %v397_v41 = vadd.f32 %v395_v34, %v388_v29  ;;  %v792_v34 = vld [vmem:[#allocation7 + $0x21] ss:$0 sm:$0xff] }
 0x145   : > { %v414_v15 = vld [vmem:[#allocation3 + $0x49] sm:$0xff]  ;;  %v314_v16 = vpop.permute.xlu0 %313  ;;  %v295_v17 = vsel %vm292_vm10, %v289_v28, %v291_v14  ;;  %v435_v28 = vmul.f32 %v786_v21, %v430_v25 }
 0x146   : > { %v422_v20 = vld [vmem:[#allocation3 + $0x61] sm:$0xff]  ;;  %v418_v22 = vmul.f32 %v785_v10, %v414_v15  ;;  %v318_v23 = vsel %vm315_vm9, %v312_v7, %v314_v16  ;;  %302 = vst [vmem:[#allocation3 + $0x40] sm:$0xff] %v295_v17  ;;  %v455_v43 = vld [vmem:[#allocation3 + $0x4a] sm:$0xff]  ;;  %v405_v55 = vadd.f32 %v403_v46, %v397_v41  ;;  %v492_v15 = vmul.f32 %v782_v1, %v488_v4  ;;  %v793_v41 = vld [vmem:[#allocation7 + $0x22] ss:$0 sm:$0xff] }
 0x147   : > { %325 = vst [vmem:[#allocation3 + $0x58] sm:$0xff] %v318_v23  ;;  %v426_v27 = vmul.f32 %v1120_v13, %v422_v20  ;;  %v463_v51 = vld [vmem:[#allocation3 + $0x62] sm:$0xff]  ;;  %v459_v54 = vmul.f32 %v787_v39, %v455_v43  ;;  %v496_v14 = vld [vmem:[#allocation3 + $0x4b] sm:$0xff]  ;;  %v436_v16 = vmul.f32 %v786_v21, %v431_v5  ;;  %v525_v46 = vmul.f32 %v792_v34, %v521_v36 }
 0x148   : > { %v420_v30 = vadd.f32 %v418_v22, %v412_v18  ;;  %v467_v60 = vmul.f32 %v784_v48, %v463_v51  ;;  %v504_v22 = vld [vmem:[#allocation3 + $0x63] sm:$0xff]  ;;  %v500_v25 = vmul.f32 %v789_v11, %v496_v14 }
 0x14a   : > { %v428_v33 = vadd.f32 %v426_v27, %v420_v30  ;;  %v791_v27 = vld [vmem:[#allocation7 + $0x20] ss:$0 sm:$0xff]  ;;  %v512_v30 = vld [vmem:[#allocation3 + $0x4] sm:$0xff] }
 0x14c   : > { %v437_v40 = vadd.f32 %v435_v28, %v428_v33  ;;  %v335_v42 = vpop.permute.xlu1 %334  ;;  %v508_v28 = vmul.f32 %v790_v19, %v504_v22 }
 0x14d   : > { %v407_v44 = vld [vmem:[#allocation3 + $0x39] sm:$0xff]  ;;  %v341_v45 = vsel %vm338_vm11, %v335_v42, %v337_v38  ;;  %v472_v42 = vld [vmem:[#allocation3 + $0xb] sm:$0xff] }
 0x14e   : > { %v445_v49 = vadd.f32 %v443_v37, %v437_v40  ;;  %v411_v50 = vmul.f32 %v780_v62, %v407_v44  ;;  %348 = vst [vmem:[#allocation3 + $0x70] sm:$0xff] %v341_v45  ;;  %v415_v57 = vld [vmem:[#allocation3 + $0x51] sm:$0xff]  ;;  %v448_v20 = vld [vmem:[#allocation3 + $0x3a] sm:$0xff]  ;;  %v517_v40 = vmul.f32 %v791_v27, %v512_v30  ;;  %v477_v51 = vmul.f32 %v788_v56, %v472_v42 }
 0x14f   : > { %v419_v53 = vmul.f32 %v785_v10, %v415_v57  ;;  %v444_v10 = vmul.f32 %v778_v26, %v440_v12  ;;  %v456_v29 = vld [vmem:[#allocation3 + $0x52] sm:$0xff]  ;;  %v452_v31 = vmul.f32 %v781_v32, %v448_v20  ;;  %v489_v57 = vld [vmem:[#allocation3 + $0x3b] sm:$0xff] }
 0x150   : > { %v453_v52 = vadd.f32 %v451_v47, %v445_v49  ;;  %v413_v63 = vadd.f32 %v411_v50, %v405_v55  ;;  %v460_v21 = vmul.f32 %v787_v39, %v456_v29  ;;  %v529_v26 = vld [vmem:[#allocation3 + $0x34] sm:$0xff]  ;;  %v481_v49 = vld [vmem:[#allocation3 + $0x23] sm:$0xff]  ;;  %v537_v32 = vld [vmem:[#allocation3 + $0x4c] sm:$0xff] }
 0x151   : > { %v794_v47 = vld [vmem:[#allocation7 + $0x23] ss:$0 sm:$0xff]  ;;  %v795_v55 = vld [vmem:[#allocation7 + $0x24] ss:$0 sm:$0xff]  ;;  %v545_v39 = vld [vmem:[#allocation3 + $0x64] sm:$0xff]  ;;  %v485_v58 = vmul.f32 %v779_v59, %v481_v49 }
 0x152   : > { %v461_v61 = vadd.f32 %v459_v54, %v453_v52  ;;  %v421_v7 = vadd.f32 %v419_v53, %v413_v63  ;;  %v533_v54 = vmul.f32 %v793_v41, %v529_v26  ;;  %v541_v63 = vmul.f32 %v794_v47, %v537_v32  ;;  %v497_v0 = vld [vmem:[#allocation3 + $0x53] sm:$0xff]  ;;  %v522_v59 = vld [vmem:[#allocation3 + $0x24] sm:$0xff]  ;;  %v530_v14 = vld [vmem:[#allocation3 + $0x3c] sm:$0xff] }
 0x154   : > { %v469_v2 = vadd.f32 %v467_v60, %v461_v61 }
 0x155   : > { %v423_v62 = vld [vmem:[#allocation3 + $0x69] sm:$0xff] }
 0x156   : > { %v427_v8 = vmul.f32 %v1120_v13, %v423_v62  ;;  %v478_v9 = vadd.f32 %v476_v3, %v469_v2  ;;  %v464_v35 = vld [vmem:[#allocation3 + $0x6a] sm:$0xff]  ;;  %v493_v2 = vmul.f32 %v782_v1, %v489_v57  ;;  %v549_v3 = vmul.f32 %v795_v55, %v545_v39 }
 0x157   : > { %v468_v44 = vmul.f32 %v784_v48, %v464_v35  ;;  %v505_v4 = vld [vmem:[#allocation3 + $0x6b] sm:$0xff]  ;;  %v501_v62 = vmul.f32 %v789_v11, %v497_v0 }
 0x158   : > { %v429_v17 = vadd.f32 %v427_v8, %v421_v7  ;;  %v486_v18 = vadd.f32 %v484_v6, %v478_v9  ;;  %v513_v6 = vld [vmem:[#allocation3 + $0xc] sm:$0xff]  ;;  %v509_v8 = vmul.f32 %v790_v19, %v505_v4 }
 0x159   : > { %v518_v12 = vmul.f32 %v791_v27, %v513_v6 }
 0x15a   : > { %v438_v23 = vadd.f32 %v436_v16, %v429_v17  ;;  %v494_v24 = vadd.f32 %v492_v15, %v486_v18  ;;  %v526_v15 = vmul.f32 %v792_v34, %v522_v59  ;;  %v538_v16 = vld [vmem:[#allocation3 + $0x54] sm:$0xff]  ;;  %v534_v17 = vmul.f32 %v793_v41, %v530_v14  ;;  %v546_v18 = vld [vmem:[#allocation3 + $0x6c] sm:$0xff] }
 0x15b   : > { %v542_v20 = vmul.f32 %v794_v47, %v538_v16 }
 0x15c   : > { %v446_v13 = vadd.f32 %v444_v10, %v438_v23  ;;  %v502_v33 = vadd.f32 %v500_v25, %v494_v24  ;;  %v550_v10 = vmul.f32 %v795_v55, %v546_v18 }
 0x15e   : > { %v454_v37 = vadd.f32 %v452_v31, %v446_v13  ;;  %v510_v38 = vadd.f32 %v508_v28, %v502_v33 }
 0x160   : > { %v462_v43 = vadd.f32 %v460_v21, %v454_v37  ;;  %v519_v45 = vadd.f32 %v517_v40, %v510_v38 }
 0x162   : > { %v470_v50 = vadd.f32 %v468_v44, %v462_v43  ;;  %v527_v52 = vadd.f32 %v525_v46, %v519_v45 }
 0x164   : > { %v479_v60 = vadd.f32 %v477_v51, %v470_v50  ;;  %v535_v61 = vadd.f32 %v533_v54, %v527_v52 }
 0x166   : > { %v487_v48 = vadd.f32 %v485_v58, %v479_v60  ;;  %v543_v53 = vadd.f32 %v541_v63, %v535_v61 }
 0x168   : > { %v495_v5 = vadd.f32 %v493_v2, %v487_v48  ;;  %v551_v56 = vadd.f32 %v549_v3, %v543_v53 }
 0x16a   : > { %v503_v7 = vadd.f32 %v501_v62, %v495_v5  ;;  %553 = vst [vmem:[%s194_s6] sm:$0xff] %v551_v56 }
 0x16c   : > { %v511_v9 = vadd.f32 %v509_v8, %v503_v7 }
 0x16e   : > { %v520_v1 = vadd.f32 %v518_v12, %v511_v9 }
 0x170   : > { %v528_v11 = vadd.f32 %v526_v15, %v520_v1 }
 0x172   : > { %v536_v19 = vadd.f32 %v534_v17, %v528_v11 }
 0x174   : > { %v544_v22 = vadd.f32 %v542_v20, %v536_v19 }
 0x176   : > { %v552_v23 = vadd.f32 %v550_v10, %v544_v22 }
 0x178   : > { %554 = vst [vmem:[%s194_s6 + $0x8] sm:$0xff] %v552_v23 }
 0x179   : > { %883 = shalt.err (!%p880_p0)
}
 0x17a   : > { %s953_s30 = smov 128   ;;  %s954_s24 = smov 8  }
 0x17b   : > { %694 = dma.vmem_to_hbm [thread:$0]  (%p1052_p5), %s571_s23, 256, %s573_s25, %s556_s12, %s953_s30, %s953_s30, %s954_s24  }
 0x17c PF: > { %s587_s27 = sand.u32 1, %s922_s9   ;;  %p705_p3 = pnand %p673_p11, %p1019_p6 }
 0x17d   : > { %s588_s28 = scalar_lea.sflag [#allocation6], %s587_s27 }
 0x17e   : > { %p706_p7 = pneg %p705_p3 }
 0x180   : > { %917 = dma.done.wait (%p706_p7), %s588_s28, 256  }
 0x181   : > { %919 = vsyncadd (%p706_p7), %s588_s28, 4294967040  ;;  %s19_s14 = sadd.s32 1, %s942_s14   ;;  %s1177_s9 = smov %s926_s10 }
 0x182   : > { %p16_p9 = scmp.ge.s32.totalorder %s19_s14, 4   ;;  %s1178_s10 = smov %s930_s11 }
 0x183   : > { %s1179_s11 = smov %s1061_s8  ;;  %s1180_s12 = smov %s938_s13 }
 0x184   : > { %s1181_s13 = smov %s1183_s29  ;;  %18 = sbr.rel (!%p16_p9) target bundleno = 7 (0x7), region = 90 }
 0x189   :  { %594 = vsyncpa [#allocation5], 1 }
 0x18a   :  { %596 = vsyncpa [#allocation5 + $0x1], 1 }
 0x18b   :  { %597 = vsyncpa [#allocation8], 1 }
 0x18c   :  { %598 = vsyncpa [#allocation6], 1 }
 0x18d   :  { %600 = vsyncpa [#allocation6 + $0x1], 1 }

</bundles_post_ra>
